<compile_context>
chip_gen: v7x
topology: tpu7x:2x2x1
jax: 0.10.0
libtpu: 0.0.40
codegen_flags: <defaults>
</compile_context>

<pallas_src>
import jax
import jax.numpy as jnp
from jax import lax
from jax.experimental import pallas as pl
from jax.experimental.pallas import tpu as pltpu

K = 4           # kernel size
S = 2           # stride
P = 1           # padding
EPS = 1e-5      # BatchNorm eps (PyTorch default)
MATMUL_DTYPE = jnp.bfloat16   # MXU operand dtype; elementwise math stays f32
MAX_TILE_HW = 2048            # lane tile for the spatial axis (multiple of 128)


def _conv_stats_kernel(w_ref, patch_ref, conv_ref, stats_ref):
    """Per (n, hw-tile): conv tile = W @ patches, plus per-channel sum/sumsq."""
    t = pl.program_id(1)

    # (OC, CK) @ (CK, T) -> (OC, T); f32 accumulation on the MXU.
    c = jnp.dot(w_ref[...], patch_ref[0], preferred_element_type=jnp.float32)
    conv_ref[0] = c

    # stats accumulator stays VMEM-resident across the "arbitrary" hw-tile axis.
    @pl.when(t == 0)
    def _():
        stats_ref[...] = jnp.zeros_like(stats_ref)

    # one-pass batch stats: per-channel sum and sum of squares (lane reduce).
    stats_ref[0, :, 0:1] = stats_ref[0, :, 0:1] + jnp.sum(c, axis=1, keepdims=True)
    stats_ref[0, :, 1:2] = stats_ref[0, :, 1:2] + jnp.sum(c * c, axis=1, keepdims=True)


def _bn_tanh_kernel(aff_ref, conv_ref, out_ref):
    """Folded BN affine + tanh: y = tanh(conv * scale + shift)."""
    scale = aff_ref[0]            # (OC, 1)
    shift = aff_ref[1]            # (OC, 1)
    out_ref[0] = jnp.tanh(conv_ref[0] * scale + shift)


@jax.jit
def cnn_cell_forward(x, conv_w, conv_b, bn_gamma, bn_beta):
    """x: (N, Cin, H, W), conv_w: (OC, Cin, 4, 4). Returns NCHW f32 output.

    conv_b is accepted for interface parity but unused: adding a per-channel
    constant before training-mode BatchNorm is a mathematical no-op.
    """
    del conv_b
    N, Cin, H, W = x.shape
    OC = conv_w.shape[0]
    OH = (H + 2 * P - K) // S + 1
    OW = (W + 2 * P - K) // S + 1
    OHW = OH * OW
    CK = Cin * K * K

    # ---- patch extraction via strided slices (no XLA gather) ---------------
    # TODO(synk): build patches inside the kernel (shifted-matmul / parity
    # decomposition) to avoid materializing the k*k/(s*s)=4x patch blowup in HBM.
    xp = jnp.pad(x, ((0, 0), (0, 0), (P, P), (P, P)))
    cols = []
    for kh in range(K):
        for kw in range(K):
            cols.append(lax.slice(
                xp, (0, 0, kh, kw),
                (N, Cin, kh + S * (OH - 1) + 1, kw + S * (OW - 1) + 1),
                (1, 1, S, S)))                       # (N, Cin, OH, OW)
    # feature ordering (cin, kh, kw) matches conv_w.reshape(OC, Cin*K*K)
    patches = jnp.stack(cols, axis=2).reshape(N, CK, OHW)

    # ---- spatial (lane) tiling ----------------------------------------------
    if OHW <= MAX_TILE_HW:
        tile_hw, ohw_pad = OHW, OHW                  # full-extent lane block
    else:
        tile_hw = MAX_TILE_HW
        ohw_pad = pl.cdiv(OHW, tile_hw) * tile_hw
        # zero-padded columns produce conv output 0 (no bias), contributing 0 to
        # sum/sumsq -> stats stay exact as long as we divide by the true count.
        patches = jnp.pad(patches, ((0, 0), (0, 0), (0, ohw_pad - OHW)))
    n_t = ohw_pad // tile_hw

    patches = patches.astype(MATMUL_DTYPE)
    w_mat = conv_w.reshape(OC, CK).astype(MATMUL_DTYPE)

    # ---- phase 1: conv (MXU) + per-channel sum / sumsq ----------------------
    conv_flat, stats = pl.pallas_call(
        _conv_stats_kernel,
        out_shape=(jax.ShapeDtypeStruct((N, OC, ohw_pad), jnp.float32),
                   jax.ShapeDtypeStruct((N, OC, 2), jnp.float32)),
        grid=(N, n_t),
        in_specs=[
            pl.BlockSpec((OC, CK), lambda n, t: (0, 0)),            # weights
            pl.BlockSpec((1, CK, tile_hw), lambda n, t: (n, 0, t)),  # patches
        ],
        out_specs=(
            pl.BlockSpec((1, OC, tile_hw), lambda n, t: (n, 0, t)),  # conv
            pl.BlockSpec((1, OC, 2), lambda n, t: (n, 0, 0)),        # accumulator
        ),
        compiler_params=pltpu.CompilerParams(
            dimension_semantics=("parallel", "arbitrary")),
    )(w_mat, patches)

    # ---- fold BN into one affine (tiny per-channel host math) ---------------
    count = jnp.float32(N * OHW)
    ch_sum = jnp.sum(stats[:, :, 0], axis=0)                         # (OC,)
    ch_sq = jnp.sum(stats[:, :, 1], axis=0)                          # (OC,)
    mean = ch_sum / count
    var = ch_sq / count - mean * mean                                # biased var
    scale = bn_gamma * lax.rsqrt(var + EPS)
    shift = bn_beta - mean * scale
    affine = jnp.stack([scale, shift], axis=0)[:, :, None].astype(jnp.float32)

    # ---- phase 2: normalize + tanh, in place over the conv buffer -----------
    out_flat = pl.pallas_call(
        _bn_tanh_kernel,
        out_shape=jax.ShapeDtypeStruct((N, OC, ohw_pad), jnp.float32),
        grid=(N, n_t),
        in_specs=[
            pl.BlockSpec((2, OC, 1), lambda n, t: (0, 0, 0)),        # scale/shift
            pl.BlockSpec((1, OC, tile_hw), lambda n, t: (n, 0, t)),  # conv
        ],
        out_specs=pl.BlockSpec((1, OC, tile_hw), lambda n, t: (n, 0, t)),
        input_output_aliases={1: 0},
        compiler_params=pltpu.CompilerParams(
            dimension_semantics=("parallel", "parallel")),
    )(affine, conv_flat)

    # (N, OC, OH*OW) -> NCHW without any host transpose.
    return out_flat[:, :, :OHW].reshape(N, OC, OH, OW)


def _reference(x, conv_w, conv_b, bn_gamma, bn_beta):
    """Pure-JAX reference of the PyTorch module (train-mode BN), NCHW.

    Conv operands are rounded to MATMUL_DTYPE to mirror the kernel's MXU operand
    precision; accumulation / BN / tanh are f32. The conv bias IS applied here
    (the kernel omits it), verifying that it cancels exactly under batch-stat BN.
    """
    xr = x.astype(MATMUL_DTYPE).astype(jnp.float32)
    wr = conv_w.astype(MATMUL_DTYPE).astype(jnp.float32)
    y = lax.conv_general_dilated(
        xr, wr, window_strides=(S, S), padding=((P, P), (P, P)),
        dimension_numbers=("NCHW", "OIHW", "NCHW"))
    y = y + conv_b[None, :, None, None]
    mean = jnp.mean(y, axis=(0, 2, 3), keepdims=True)
    var = jnp.mean((y - mean) ** 2, axis=(0, 2, 3), keepdims=True)
    yn = (y - mean) * lax.rsqrt(var + EPS)
    yn = yn * bn_gamma[None, :, None, None] + bn_beta[None, :, None, None]
    return jnp.tanh(yn)


if __name__ == "__main__":
    key = jax.random.PRNGKey(0)
    k_x, k_w, k_b, k_g, k_be = jax.random.split(key, 5)

    N, Cin, Hh, Ww = 2, 4, 16, 16
    Cout = 8

    x = jax.random.normal(k_x, (N, Cin, Hh, Ww), dtype=jnp.float32)

    # Deterministic parameter init (shapes follow nn.Conv2d / nn.BatchNorm2d).
    fan_in = Cin * K * K
    bound = 1.0 / (fan_in ** 0.5)
    conv_w = jax.random.uniform(k_w, (Cout, Cin, K, K), jnp.float32, -bound, bound)
    conv_b = jax.random.uniform(k_b, (Cout,), jnp.float32, -bound, bound)
    bn_gamma = jax.random.uniform(k_g, (Cout,), jnp.float32, 0.5, 1.5)
    bn_beta = jax.random.uniform(k_be, (Cout,), jnp.float32, -0.5, 0.5)

    out = cnn_cell_forward(x, conv_w, conv_b, bn_gamma, bn_beta)
    out = jax.block_until_ready(out)

    ref = _reference(x, conv_w, conv_b, bn_gamma, bn_beta)
    assert out.shape == (N, Cout, Hh // 2, Ww // 2)
    assert jnp.allclose(out, ref, atol=1e-4, rtol=1e-4), \
        float(jnp.max(jnp.abs(out - ref)))

    print("KERNEL_OK")
</pallas_src>

<mosaic_0001>
module attributes {stable_mosaic.version = 11 : i64} {
  func.func @_conv_stats_kernel(%arg0: i32, %arg1: i32, %arg2: memref<8x64xbf16, #tpu.memory_space<vmem>>, %arg3: memref<1x64x64xbf16, #tpu.memory_space<vmem>>, %arg4: memref<1x8x64xf32, #tpu.memory_space<vmem>>, %arg5: memref<1x8x2xf32, #tpu.memory_space<vmem>>) attributes {dimension_semantics = [#tpu.dimension_semantics<parallel>, #tpu.dimension_semantics<arbitrary>], iteration_bounds = array<i64: 2, 1>, scalar_prefetch = 0 : i64, scratch_operands = 0 : i64, tpu.core_type = #tpu.core_type<tc>, window_params = [{pipeline_mode = #tpu.pipeline_mode<synchronous>, transform_indices = @transform_0, window_bounds = array<i64: 8, 64>}, {transform_indices = @transform_1, window_bounds = array<i64: 1, 64, 64>}, {transform_indices = @transform_2, window_bounds = array<i64: 1, 8, 64>}, {transform_indices = @transform_3, window_bounds = array<i64: 1, 8, 2>}]} {
    %c0 = arith.constant 0 : index
    %c0_0 = arith.constant 0 : index
    %0 = vector.load %arg2[%c0, %c0_0] : memref<8x64xbf16, #tpu.memory_space<vmem>>, vector<8x64xbf16>
    %c0_1 = arith.constant 0 : index
    %c0_2 = arith.constant 0 : index
    %c0_3 = arith.constant 0 : index
    %1 = vector.load %arg3[%c0_1, %c0_2, %c0_3] : memref<1x64x64xbf16, #tpu.memory_space<vmem>>, vector<1x64x64xbf16>
    %2 = vector.shape_cast %1 : vector<1x64x64xbf16> to vector<64x64xbf16>
    %cst = arith.constant dense<0.000000e+00> : vector<8x64xf32>
    %3 = tpu.matmul %0, %2, %cst {dimension_numbers = #tpu.dot_dimension_numbers<[1], [0], [0], [1], [0, 0, 1, 1], [], []>} : vector<8x64xbf16>, vector<64x64xbf16>, vector<8x64xf32> -> vector<8x64xf32>
    %c0_4 = arith.constant 0 : index
    %c0_5 = arith.constant 0 : index
    %c0_6 = arith.constant 0 : index
    %4 = vector.load %arg4[%c0_4, %c0_5, %c0_6] : memref<1x8x64xf32, #tpu.memory_space<vmem>>, vector<1x8x64xf32>
    %5 = vector.shape_cast %4 : vector<1x8x64xf32> to vector<8x64xf32>
    %6 = vector.shape_cast %3 : vector<8x64xf32> to vector<1x8x64xf32>
    tpu.vector_store %arg4[%c0_4, %c0_5, %c0_6], %6 {strides = array<i32>} : memref<1x8x64xf32, #tpu.memory_space<vmem>>, vector<1x8x64xf32>,
    %c0_i32 = arith.constant 0 : i32
    %7 = arith.cmpi eq, %arg1, %c0_i32 : i32
    %8 = arith.extui %7 : i1 to i32
    %c0_i32_7 = arith.constant 0 : i32
    %9 = arith.cmpi ne, %8, %c0_i32_7 : i32
    scf.if %9 {
      %cst_21 = arith.constant 0.000000e+00 : f32
      %27 = vector.broadcast %cst_21 : f32 to vector<1x8x2xf32>
      %c0_22 = arith.constant 0 : index
      %c0_23 = arith.constant 0 : index
      %c0_24 = arith.constant 0 : index
      %28 = vector.load %arg5[%c0_22, %c0_23, %c0_24] : memref<1x8x2xf32, #tpu.memory_space<vmem>>, vector<1x8x2xf32>
      tpu.vector_store %arg5[%c0_22, %c0_23, %c0_24], %27 {strides = array<i32>} : memref<1x8x2xf32, #tpu.memory_space<vmem>>, vector<1x8x2xf32>,
    } else {
    }
    %c0_8 = arith.constant 0 : index
    %c0_9 = arith.constant 0 : index
    %c0_10 = arith.constant 0 : index
    %10 = vector.load %arg5[%c0_8, %c0_9, %c0_10] : memref<1x8x2xf32, #tpu.memory_space<vmem>>, vector<1x8x1xf32>
    %11 = vector.shape_cast %10 : vector<1x8x1xf32> to vector<8x1xf32>
    %cst_11 = arith.constant dense<0.000000e+00> : vector<8xf32>
    %12 = vector.multi_reduction <add>, %3, %cst_11 [1] : vector<8x64xf32> to vector<8xf32>
    %13 = vector.shape_cast %12 : vector<8xf32> to vector<8x1xf32>
    %14 = arith.addf %11, %13 : vector<8x1xf32>
    %c0_12 = arith.constant 0 : index
    %c0_13 = arith.constant 0 : index
    %c0_14 = arith.constant 0 : index
    %15 = vector.load %arg5[%c0_12, %c0_13, %c0_14] : memref<1x8x2xf32, #tpu.memory_space<vmem>>, vector<1x8x1xf32>
    %16 = vector.shape_cast %15 : vector<1x8x1xf32> to vector<8x1xf32>
    %17 = vector.shape_cast %14 : vector<8x1xf32> to vector<1x8x1xf32>
    tpu.vector_store %arg5[%c0_12, %c0_13, %c0_14], %17 {strides = array<i32>} : memref<1x8x2xf32, #tpu.memory_space<vmem>>, vector<1x8x1xf32>,
    %c0_15 = arith.constant 0 : index
    %c0_16 = arith.constant 0 : index
    %c1 = arith.constant 1 : index
    %18 = vector.load %arg5[%c0_15, %c0_16, %c1] : memref<1x8x2xf32, #tpu.memory_space<vmem>>, vector<1x8x1xf32>
    %19 = vector.shape_cast %18 : vector<1x8x1xf32> to vector<8x1xf32>
    %20 = arith.mulf %3, %3 : vector<8x64xf32>
    %cst_17 = arith.constant dense<0.000000e+00> : vector<8xf32>
    %21 = vector.multi_reduction <add>, %20, %cst_17 [1] : vector<8x64xf32> to vector<8xf32>
    %22 = vector.shape_cast %21 : vector<8xf32> to vector<8x1xf32>
    %23 = arith.addf %19, %22 : vector<8x1xf32>
    %c0_18 = arith.constant 0 : index
    %c0_19 = arith.constant 0 : index
    %c1_20 = arith.constant 1 : index
    %24 = vector.load %arg5[%c0_18, %c0_19, %c1_20] : memref<1x8x2xf32, #tpu.memory_space<vmem>>, vector<1x8x1xf32>
    %25 = vector.shape_cast %24 : vector<1x8x1xf32> to vector<8x1xf32>
    %26 = vector.shape_cast %23 : vector<8x1xf32> to vector<1x8x1xf32>
    tpu.vector_store %arg5[%c0_18, %c0_19, %c1_20], %26 {strides = array<i32>} : memref<1x8x2xf32, #tpu.memory_space<vmem>>, vector<1x8x1xf32>,
    return
  }
  func.func @transform_0(%arg0: i32, %arg1: i32) -> (i32, i32) {
    %c0_i32 = arith.constant 0 : i32
    %c0_i32_0 = arith.constant 0 : i32
    %c0_i32_1 = arith.constant 0 : i32
    return %c0_i32, %c0_i32_0 : i32, i32
  }
  func.func @transform_1(%arg0: i32, %arg1: i32) -> (i32, i32, i32) {
    %c0_i32 = arith.constant 0 : i32
    %c0_i32_0 = arith.constant 0 : i32
    return %arg0, %c0_i32, %arg1 : i32, i32, i32
  }
  func.func @transform_2(%arg0: i32, %arg1: i32) -> (i32, i32, i32) {
    %c0_i32 = arith.constant 0 : i32
    %c0_i32_0 = arith.constant 0 : i32
    return %arg0, %c0_i32, %arg1 : i32, i32, i32
  }
  func.func @transform_3(%arg0: i32, %arg1: i32) -> (i32, i32, i32) {
    %c0_i32 = arith.constant 0 : i32
    %c0_i32_0 = arith.constant 0 : i32
    %c0_i32_1 = arith.constant 0 : i32
    return %arg0, %c0_i32, %c0_i32_0 : i32, i32, i32
  }
}

module attributes {stable_mosaic.version = 11 : i64} {
  func.func @_bn_tanh_kernel(%arg0: i32, %arg1: i32, %arg2: memref<2x8x1xf32, #tpu.memory_space<vmem>>, %arg3: memref<1x8x64xf32, #tpu.memory_space<vmem>>, %arg4: memref<1x8x64xf32, #tpu.memory_space<vmem>>) attributes {dimension_semantics = [#tpu.dimension_semantics<parallel>, #tpu.dimension_semantics<parallel>], iteration_bounds = array<i64: 2, 1>, scalar_prefetch = 0 : i64, scratch_operands = 0 : i64, tpu.core_type = #tpu.core_type<tc>, window_params = [{pipeline_mode = #tpu.pipeline_mode<synchronous>, transform_indices = @transform_0, window_bounds = array<i64: 2, 8, 1>}, {transform_indices = @transform_1, window_bounds = array<i64: 1, 8, 64>}, {transform_indices = @transform_2, window_bounds = array<i64: 1, 8, 64>}]} {
    %c0 = arith.constant 0 : index
    %c0_0 = arith.constant 0 : index
    %c0_1 = arith.constant 0 : index
    %0 = vector.load %arg2[%c0, %c0_0, %c0_1] : memref<2x8x1xf32, #tpu.memory_space<vmem>>, vector<1x8x1xf32>
    %1 = vector.shape_cast %0 : vector<1x8x1xf32> to vector<8x1xf32>
    %c1 = arith.constant 1 : index
    %c0_2 = arith.constant 0 : index
    %c0_3 = arith.constant 0 : index
    %2 = vector.load %arg2[%c1, %c0_2, %c0_3] : memref<2x8x1xf32, #tpu.memory_space<vmem>>, vector<1x8x1xf32>
    %3 = vector.shape_cast %2 : vector<1x8x1xf32> to vector<8x1xf32>
    %c0_4 = arith.constant 0 : index
    %c0_5 = arith.constant 0 : index
    %c0_6 = arith.constant 0 : index
    %4 = vector.load %arg3[%c0_4, %c0_5, %c0_6] : memref<1x8x64xf32, #tpu.memory_space<vmem>>, vector<1x8x64xf32>
    %5 = vector.shape_cast %4 : vector<1x8x64xf32> to vector<8x64xf32>
    %6 = vector.broadcast %1 : vector<8x1xf32> to vector<8x64xf32>
    %7 = arith.mulf %5, %6 : vector<8x64xf32>
    %8 = vector.broadcast %3 : vector<8x1xf32> to vector<8x64xf32>
    %9 = arith.addf %7, %8 : vector<8x64xf32>
    %10 = math.tanh %9 : vector<8x64xf32>
    %c0_7 = arith.constant 0 : index
    %c0_8 = arith.constant 0 : index
    %c0_9 = arith.constant 0 : index
    %11 = vector.load %arg4[%c0_7, %c0_8, %c0_9] : memref<1x8x64xf32, #tpu.memory_space<vmem>>, vector<1x8x64xf32>
    %12 = vector.shape_cast %11 : vector<1x8x64xf32> to vector<8x64xf32>
    %13 = vector.shape_cast %10 : vector<8x64xf32> to vector<1x8x64xf32>
    tpu.vector_store %arg4[%c0_7, %c0_8, %c0_9], %13 {strides = array<i32>} : memref<1x8x64xf32, #tpu.memory_space<vmem>>, vector<1x8x64xf32>,
    return
  }
  func.func @transform_0(%arg0: i32, %arg1: i32) -> (i32, i32, i32) {
    %c0_i32 = arith.constant 0 : i32
    %c0_i32_0 = arith.constant 0 : i32
    %c0_i32_1 = arith.constant 0 : i32
    %c0_i32_2 = arith.constant 0 : i32
    return %c0_i32, %c0_i32_0, %c0_i32_1 : i32, i32, i32
  }
  func.func @transform_1(%arg0: i32, %arg1: i32) -> (i32, i32, i32) {
    %c0_i32 = arith.constant 0 : i32
    %c0_i32_0 = arith.constant 0 : i32
    return %arg0, %c0_i32, %arg1 : i32, i32, i32
  }
  func.func @transform_2(%arg0: i32, %arg1: i32) -> (i32, i32, i32) {
    %c0_i32 = arith.constant 0 : i32
    %c0_i32_0 = arith.constant 0 : i32
    return %arg0, %c0_i32, %arg1 : i32, i32, i32
  }
}

</mosaic_0001>

<bundles_post_ra>
// kernel: cnn_cell_forward.3
= control target key start
LH: loop header
LB: loop body
LE: loop exit
PB: predicated region body
PF: predicated region fallthrough
CT: control target
= control target key end

     0   :  { %s341_s9 = smov 0   ;;  %s343_s10 = smov 0   ;;  %s377_s0 = inlined_call_operand.vmem [shape: f32[2,8,1], index: 0, kind: input, shape index: {}]   ;;  %s378_s1 = inlined_call_operand.vmem [shape: f32[2,8,64], index: 1, kind: input, shape index: {}, may-alias: {1,2}]   ;;  %s379_s2 = inlined_call_operand.vmem [shape: f32[2,8,64], index: 2, kind: output, shape index: {}, may-alias: {1,2}]  }
   0x1   :  { %s345_s11 = smov 0  }
   0x2 LB: > { %s24_s12 = sadd.s32 1, %s319_s10  ;;  %p267_p0 = scmp.ge.s32.totalorder %s323_s11, 1  ;;  %s323_s11 = sphi %s345_s11, %s12_s11   ;;  %s319_s10 = sphi %s343_s10, %s381_s10   ;;  %s315_s9 = sphi %s341_s9, %s380_s9  }
   0x3   : > { %p26_p1 = scmp.ge.s32.totalorder %s24_s12, 2  ;;  %p130_p2 = scmp.lt.s32.totalorder %s323_s11, 3 }
   0x5   : > { %s383_s12 = smov (%p26_p1, %s24_s12), 0  ;;  %p131_p3 = pnand %p267_p0, %p130_p2 }
   0x6   : > { %v170_v0 = vld [vmem:[%s377_s0] sm:$0xff] (!%p131_p3)  ;;  %v325_v1 = vmov (!%p131_p3), 0   ;;  %v270_v2 = vld [vmem:[%s377_s0 + $0x8] sm:$0xff] (!%p131_p3)  ;;  %p156_p4 = scmp.lt.s32.totalorder (!%p131_p3), %s315_s9, 1  ;;  %vm187_vm0 = vcmask (!%p131_p3), 523264  }
   0x7   : > { %134 = sbr.rel (%p131_p3) target bundleno = 154 (0x9a), region = 28  ;;  %298 = vset.pattern.permute.xlu0 (!%p131_p3), %v325_v1 }
   0x8   : > { %176 = vperm.xlu0 (!%p131_p3), %298, %v170_v0  }
   0xc   : > { %182 = vperm.xlu0 (!%p131_p3), %298, %v270_v2  }
   0xe   : > { %s385_s9 = smov (!%p156_p4, %s315_s9), 1 }
   0xf   : > { %s268_s17 = sshll.u32 %s385_s9, 3 }
  0x10   : > { %s162_s20 = scalar_lea.vmem %s378_s1, %s268_s17  ;;  %s169_s23 = scalar_lea.vmem %s379_s2, %s268_s17 }
  0x11   : > { %v173_v4 = vld [vmem:[%s162_s20] sm:$0xff] }
  0x87   : > { %v177_v3 = vpop.permute.xlu0 %176 }
  0x88   : > { %v179_v5 = vmul.f32 %v177_v3, %v173_v4 }
  0x8b   : > { %v183_v6 = vpop.permute.xlu0 %182 }
  0x8c   : > { %v185_v7 = vadd.f32 %v183_v6, %v179_v5 }
  0x8e   : > { %299 = vtanh.f32 %v185_v7 }
  0x98   : > { %v300_v8 = vpop.eup %299 }
  0x99   : > { %188 = vst.msk [vmem:[%s169_s23] sm:$0xff] %vm187_vm0, %v300_v8 }
  0x9a PF: > { %s12_s11 = sadd.s32 1, %s323_s11   ;;  %s380_s9 = smov %s319_s10 }
  0x9b   : > { %p9_p5 = scmp.ge.s32.totalorder %s12_s11, 4   ;;  %s381_s10 = smov %s383_s12 }
  0x9d   :  { %11 = sbr.rel (!%p9_p5) target bundleno = 2 (0x2), region = 59 }

// kernel: cnn_cell_forward.2
= control target key start
LH: loop header
LB: loop body
LE: loop exit
PB: predicated region body
PF: predicated region fallthrough
CT: control target
= control target key end

     0   :  { %s529_s12 = smov 0   ;;  %s531_s13 = smov 0   ;;  %s568_s0 = inlined_call_operand.vmem [shape: bf16[8,64], index: 0, kind: input, shape index: {}]   ;;  %s569_s1 = inlined_call_operand.vmem [shape: bf16[2,64,64], index: 1, kind: input, shape index: {}]   ;;  %s570_s2 = inlined_call_operand.vmem [shape: f32[2,8,64], index: 2, kind: output, shape index: {0}]   ;;  %s571_s3 = inlined_call_operand.vmem [shape: f32[2,8,2], index: 3, kind: output, shape index: {1}]  }
   0x1   :  { %s533_s14 = smov 0  }
   0x2 LB: > { %s26_s15 = sadd.s32 1, %s501_s13  ;;  %p423_p0 = scmp.ge.s32.totalorder %s505_s14, 1  ;;  %s505_s14 = sphi %s533_s14, %s14_s14   ;;  %s501_s13 = sphi %s531_s13, %s573_s13   ;;  %s497_s12 = sphi %s529_s12, %s572_s12  }
   0x3   : > { %p28_p1 = scmp.ge.s32.totalorder %s26_s15, 2  ;;  %p159_p2 = scmp.lt.s32.totalorder %s505_s14, 3 }
   0x5   : > { %s575_s15 = smov (%p28_p1, %s26_s15), 0  ;;  %p160_p3 = pnand %p423_p0, %p159_p2 }
   0x6   : > { %p192_p4 = scmp.lt.s32.totalorder (!%p160_p3), %s497_s12, 1  ;;  %v507_v0 = vmov (!%p160_p3), 0.0   ;;  %vm508_vm0 = vmmov (!%p160_p3), 0   ;;  %v212_v5 = vld [vmem:[%s568_s0] sm:$0xf] (!%p160_p3)  ;;  %vm245_vm1 = vcmask (!%p160_p3), 523264  }
   0x7   : > { %163 = sbr.rel (%p160_p3) target bundleno = 401 (0x191), region = 28  ;;  %441 = vmatprep.subr.bf16.mxu0 (!%p160_p3), %v507_v0  ;;  %449 = vmatprep.mubr.msk.bf16.mxu0 (!%p160_p3), %vm508_vm0, %v507_v0  ;;  %vm294_vm2 = vcmask (!%p160_p3), 15360   ;;  %vm301_vm3 = vcmask (!%p160_p3), 7168   ;;  %vm309_vm4 = vcmask (!%p160_p3), 15368  }
   0xe   : > { %s577_s12 = smov (!%p192_p4, %s497_s12), 1 }
   0xf   : > { %s435_s16 = sshll.u32 %s577_s12, 5  ;;  %s426_s22 = sshll.u32 %s577_s12, 3 }
  0x10   : > { %s199_s19 = scalar_lea.vmem %s569_s1, %s435_s16  ;;  %s210_s25 = scalar_lea.vmem %s571_s3, %s426_s22 }
  0x11   : > { %v479_v1 = vld [vmem:[%s199_s19] sm:$0xff]   ;;  %v480_v2 = vld [vmem:[%s199_s19 + $0x8] sm:$0xff]   ;;  %v481_v3 = vld [vmem:[%s199_s19 + $0x10] sm:$0xff]   ;;  %295 = vst.msk [vmem:[%s210_s25] sm:$0xff] %vm294_vm2, %v507_v0  ;;  %s206_s28 = scalar_lea.vmem %s570_s2, %s426_s22 }
  0x12   : > { %442 = vmatpush3.bf16.msra.mxu0 %v479_v1  ;;  %v482_v4 = vld [vmem:[%s199_s19 + $0x18] sm:$0xff]  }
  0x13   : > { %443 = vmatprep.subr.bf16.mxu0 %v507_v0 }
  0x16   : > { %444 = vmatpush3.bf16.msra.mxu0 %v480_v2 }
  0x17   : > { %445 = vmatprep.subr.bf16.mxu0 %v507_v0 }
  0x18   : > { %v296_v13 = vld [vmem:[%s210_s25] sm:$0xff] }
  0x1a   : > { %446 = vmatpush3.bf16.msra.mxu0 %v481_v3 }
  0x1b   : > { %447 = vmatprep.subr.bf16.mxu0 %v507_v0 }
  0x1e   : > { %448 = vmatpush3.bf16.msra.mxu0 %v482_v4 }
  0x21   : > { %450 = vmatmul.mubr.msk.bf16.vlgmr.msra.gmra.mrb[0].mxu0 %vm245_vm1, %v212_v5 }
  0xf4   : > { %v283_v6 = vpop.f32.mrb[0].mxu0 }
  0xf5   : > { %289 = vst.msk [vmem:[%s206_s28] sm:$0xff] %vm245_vm1, %v283_v6  ;;  %v451_v7 = vpop.f32.mrb[1].mxu0  ;;  %v297_v8 = vsel %vm245_vm1, %v283_v6, 0.0  ;;  %v304_v9 = vmul.f32 %v283_v6, %v283_v6 }
  0xf6   : > { %298 = vadd.xlane.f32.xlu0 %v297_v8  ;;  %v286_v10 = vpop.f32.mrb[2].mxu0 }
  0xf7   : > { %v452_v11 = vpop.f32.mrb[3].mxu0  ;;  %v305_v12 = vsel %vm245_vm1, %v304_v9, 0.0 }
  0xfa   : > { %306 = vadd.xlane.f32.xlu0 %v305_v12 }
 0x183   : > { %v299_v14 = vpop.xlane.xlu0 %298 }
 0x184   : > { %v300_v15 = vadd.f32 %v299_v14, %v296_v13 }
 0x186   : > { %302 = vst.msk [vmem:[%s210_s25] sm:$0xff] %vm301_vm3, %v300_v15 }
 0x187   : > { %v307_v17 = vpop.xlane.xlu0 %306 }
 0x18d   : > { %v303_v16 = vld [vmem:[%s210_s25] sm:$0xff] }
 0x18e   : > { %v308_v18 = vadd.f32 %v307_v17, %v303_v16 }
 0x190   : > { %310 = vst.msk [vmem:[%s210_s25] sm:$0xff] %vm309_vm4, %v308_v18 }
 0x191 PF: > { %s14_s14 = sadd.s32 1, %s505_s14   ;;  %s572_s12 = smov %s501_s13 }
 0x192   : > { %p11_p5 = scmp.ge.s32.totalorder %s14_s14, 4   ;;  %s573_s13 = smov %s575_s15 }
 0x194   :  { %13 = sbr.rel (!%p11_p5) target bundleno = 2 (0x2), region = 74 }

</bundles_post_ra>
